<compile_context>
chip_gen: v5e
topology: v5e:2x2
jax: 0.10.0
libtpu: 0.0.40
codegen_flags: <defaults>
</compile_context>

<pallas_src>
import jax
import jax.numpy as jnp
from jax import lax
from jax.experimental import pallas as pl
from jax.experimental.pallas import tpu as pltpu


def focus_kernel(xT_ref, w_ref, b_ref, o_ref):
    # xT_ref: (4C, TM)   w_ref: (Cout, 4C)   b_ref: (Cout, 1)   o_ref: (Cout, TM)
    acc = jnp.dot(w_ref[...], xT_ref[...], preferred_element_type=jnp.float32)
    o_ref[...] = jnp.maximum(acc + b_ref[...], 0.0).astype(o_ref.dtype)


def _round_up(a, b):
    return ((a + b - 1) // b) * b


def focus_pallas(x_nchw, w_oihw, gamma, beta, mean, var, eps=1e-5, tm=512):
    """Focus forward. x_nchw: (N,C,H,W); w_oihw: (Cout, 4C, 1, 1); BN params (Cout,)."""
    N, C, H, W = x_nchw.shape
    Cout = w_oihw.shape[0]
    Ho, Wo = H // 2, W // 2
    K4 = 4 * C
    M = N * Ho * Wo

    # ---- space-to-depth (layout plumbing, zero flops) -----------------------
    # PyTorch Focus channel order: (top_left, bot_left, top_right, bot_right)
    tl = x_nchw[:, :, 0::2, 0::2]
    tr = x_nchw[:, :, 0::2, 1::2]
    bl = x_nchw[:, :, 1::2, 0::2]
    br = x_nchw[:, :, 1::2, 1::2]
    xc = jnp.concatenate([tl, bl, tr, br], axis=1)              # (N, 4C, Ho, Wo)
    # contraction dim (4C) on sublanes, flattened batch*spatial on lanes
    xT = jnp.transpose(xc, (1, 0, 2, 3)).reshape(K4, M)         # (4C, M)

    # ---- fold eval-mode BatchNorm: scale into weights, keep bias ------------
    scale = gamma / jnp.sqrt(var + eps)                          # (Cout,)
    bias = beta - mean * scale                                   # (Cout,)
    w = w_oihw[:, :, 0, 0] * scale[:, None]                      # (Cout, 4C)
    b = bias.reshape(Cout, 1)                                    # (Cout, 1)

    # ---- lane-aligned M tiling ----------------------------------------------
    TM = min(tm, _round_up(M, 128))
    Mp = _round_up(M, TM)
    if Mp != M:
        xT = jnp.pad(xT, ((0, 0), (0, Mp - M)))

    flops = 2 * M * K4 * Cout + 2 * M * Cout
    bytes_accessed = 4 * (K4 * Mp + Cout * K4 + Cout + Cout * Mp)

    yT = pl.pallas_call(
        focus_kernel,
        out_shape=jax.ShapeDtypeStruct((Cout, Mp), x_nchw.dtype),
        grid=(Mp // TM,),
        in_specs=[
            pl.BlockSpec((K4, TM), lambda i: (0, i)),      # activations tile
            pl.BlockSpec((Cout, K4), lambda i: (0, 0)),    # folded weights
            pl.BlockSpec((Cout, 1), lambda i: (0, 0)),     # folded BN bias
        ],
        out_specs=pl.BlockSpec((Cout, TM), lambda i: (0, i)),
        compiler_params=pltpu.CompilerParams(
            dimension_semantics=("parallel",)),
        cost_estimate=pl.CostEstimate(
            flops=flops, transcendentals=0, bytes_accessed=bytes_accessed),
    )(xT, w, b)

    # ---- back to PyTorch NCHW output layout ---------------------------------
    y = yT[:, :M].reshape(Cout, N, Ho, Wo)
    return jnp.transpose(y, (1, 0, 2, 3))                        # (N, Cout, Ho, Wo)


def reference_forward(x_nchw, w_oihw, gamma, beta, mean, var, eps=1e-5):
    """Pure-JAX reference matching the PyTorch Focus module (eval-mode BN)."""
    tl = x_nchw[:, :, 0::2, 0::2]
    tr = x_nchw[:, :, 0::2, 1::2]
    bl = x_nchw[:, :, 1::2, 0::2]
    br = x_nchw[:, :, 1::2, 1::2]
    xc = jnp.concatenate([tl, bl, tr, br], axis=1)
    y = lax.conv_general_dilated(
        xc, w_oihw, window_strides=(1, 1), padding='VALID',
        dimension_numbers=('NCHW', 'OIHW', 'NCHW'))
    s = (gamma / jnp.sqrt(var + eps)).reshape(1, -1, 1, 1)
    b = (beta - mean * gamma / jnp.sqrt(var + eps)).reshape(1, -1, 1, 1)
    return jnp.maximum(y * s + b, 0.0)


if __name__ == "__main__":
    key = jax.random.PRNGKey(0)
    N, C, H, W = 2, 4, 16, 16          # in_channels=4 -> conv sees 16 channels
    Cout = 32
    keys = jax.random.split(key, 6)

    x = jax.random.normal(keys[0], (N, C, H, W), jnp.float32)
    w_oihw = 0.2 * jax.random.normal(keys[1], (Cout, 4 * C, 1, 1), jnp.float32)
    gamma = 1.0 + 0.1 * jax.random.normal(keys[2], (Cout,), jnp.float32)
    beta = 0.1 * jax.random.normal(keys[3], (Cout,), jnp.float32)
    mean = 0.1 * jax.random.normal(keys[4], (Cout,), jnp.float32)
    var = jnp.abs(jax.random.normal(keys[5], (Cout,), jnp.float32)) + 0.5

    run = jax.jit(focus_pallas)
    y = jax.block_until_ready(run(x, w_oihw, gamma, beta, mean, var))

    y_ref = reference_forward(x, w_oihw, gamma, beta, mean, var)
    assert y.shape == (N, Cout, H // 2, W // 2)
    assert jnp.allclose(y, y_ref, rtol=1e-4, atol=1e-4), \
        float(jnp.max(jnp.abs(y - y_ref)))

    print("KERNEL_OK")
</pallas_src>

<mosaic_0001>
module attributes {stable_mosaic.version = 11 : i64} {
  func.func @focus_kernel(%arg0: i32, %arg1: memref<16x128xf32, #tpu.memory_space<vmem>>, %arg2: memref<32x16xf32, #tpu.memory_space<vmem>>, %arg3: memref<32x1xf32, #tpu.memory_space<vmem>>, %arg4: memref<32x128xf32, #tpu.memory_space<vmem>>) attributes {dimension_semantics = [#tpu.dimension_semantics<parallel>], iteration_bounds = array<i64: 1>, scalar_prefetch = 0 : i64, scratch_operands = 0 : i64, tpu.core_type = #tpu.core_type<tc>, window_params = [{transform_indices = @transform_0, window_bounds = array<i64: 16, 128>}, {pipeline_mode = #tpu.pipeline_mode<synchronous>, transform_indices = @transform_1, window_bounds = array<i64: 32, 16>}, {pipeline_mode = #tpu.pipeline_mode<synchronous>, transform_indices = @transform_2, window_bounds = array<i64: 32, 1>}, {transform_indices = @transform_3, window_bounds = array<i64: 32, 128>}]} {
    %c0 = arith.constant 0 : index
    %c0_0 = arith.constant 0 : index
    %0 = vector.load %arg2[%c0, %c0_0] : memref<32x16xf32, #tpu.memory_space<vmem>>, vector<32x16xf32>
    %c0_1 = arith.constant 0 : index
    %c0_2 = arith.constant 0 : index
    %1 = vector.load %arg1[%c0_1, %c0_2] : memref<16x128xf32, #tpu.memory_space<vmem>>, vector<16x128xf32>
    %cst = arith.constant dense<0.000000e+00> : vector<32x128xf32>
    %2 = tpu.matmul %0, %1, %cst {dimension_numbers = #tpu.dot_dimension_numbers<[1], [0], [0], [1], [0, 0, 1, 1], [], []>} : vector<32x16xf32>, vector<16x128xf32>, vector<32x128xf32> -> vector<32x128xf32>
    %c0_3 = arith.constant 0 : index
    %c0_4 = arith.constant 0 : index
    %3 = vector.load %arg3[%c0_3, %c0_4] : memref<32x1xf32, #tpu.memory_space<vmem>>, vector<32x1xf32>
    %4 = vector.broadcast %3 : vector<32x1xf32> to vector<32x128xf32>
    %5 = arith.addf %2, %4 : vector<32x128xf32>
    %cst_5 = arith.constant 0.000000e+00 : f32
    %6 = vector.broadcast %cst_5 : f32 to vector<32x128xf32>
    %7 = arith.maximumf %5, %6 : vector<32x128xf32>
    %c0_6 = arith.constant 0 : index
    %c0_7 = arith.constant 0 : index
    %8 = vector.load %arg4[%c0_6, %c0_7] : memref<32x128xf32, #tpu.memory_space<vmem>>, vector<32x128xf32>
    tpu.vector_store %arg4[%c0_6, %c0_7], %7 {strides = array<i32>} : memref<32x128xf32, #tpu.memory_space<vmem>>, vector<32x128xf32>,
    return
  }
  func.func @transform_0(%arg0: i32) -> (i32, i32) {
    %c0_i32 = arith.constant 0 : i32
    %c0_i32_0 = arith.constant 0 : i32
    return %c0_i32, %arg0 : i32, i32
  }
  func.func @transform_1(%arg0: i32) -> (i32, i32) {
    %c0_i32 = arith.constant 0 : i32
    %c0_i32_0 = arith.constant 0 : i32
    %c0_i32_1 = arith.constant 0 : i32
    return %c0_i32, %c0_i32_0 : i32, i32
  }
  func.func @transform_2(%arg0: i32) -> (i32, i32) {
    %c0_i32 = arith.constant 0 : i32
    %c0_i32_0 = arith.constant 0 : i32
    %c0_i32_1 = arith.constant 0 : i32
    return %c0_i32, %c0_i32_0 : i32, i32
  }
  func.func @transform_3(%arg0: i32) -> (i32, i32) {
    %c0_i32 = arith.constant 0 : i32
    %c0_i32_0 = arith.constant 0 : i32
    return %c0_i32, %arg0 : i32, i32
  }
}

</mosaic_0001>

<bundles_post_ra>
// kernel: focus_pallas.1
= control target key start
LH: loop header
LB: loop body
LE: loop exit
PB: predicated region body
PF: predicated region fallthrough
CT: control target
= control target key end

     0   :  { %v111_v2 = vmov 0   ;;  %vm44_vm0 = vcmask 130048   ;;  %s174_s0 = inlined_call_operand.vmem [shape: f32[16,128], index: 0, kind: input, shape index: {}]   ;;  %s175_s1 = inlined_call_operand.vmem [shape: f32[32,16], index: 1, kind: input, shape index: {}]   ;;  %s176_s2 = inlined_call_operand.vmem [shape: f32[32,1], index: 2, kind: input, shape index: {}]   ;;  %s177_s3 = inlined_call_operand.vmem [shape: f32[32,128], index: 3, kind: output, shape index: {}]  }
   0x1   :  { %v19_v0 = vld [vmem:[%s174_s0 + $0x8] sm:$0xff]  ;;  %v18_v1 = vld [vmem:[%s174_s0] sm:$0xff]  ;;  %110 = vset.pattern.permute.xlu1 %v111_v2  ;;  %109 = vset.pattern.permute.xlu0 %v111_v2  ;;  %v16_v5 = vld [vmem:[%s175_s1 + $0x10] sm:$0xff] }
   0x2   :  { %71 = vmatpush.msra.mxu0 %v19_v0  ;;  %102 = vmatpush.msra.mxu1 %v19_v0  ;;  %v14_v3 = vld [vmem:[%s175_s1] sm:$0xff]  ;;  %v15_v4 = vld [vmem:[%s175_s1 + $0x8] sm:$0xff]  ;;  %v17_v6 = vld [vmem:[%s175_s1 + $0x18] sm:$0xff] }
   0x3   :  { %103 = vmatpush.msra.mxu2 %v19_v0  ;;  %104 = vmatpush.msra.mxu3 %v19_v0  ;;  %v22_v7 = vld [vmem:[%s176_s2 + $0x10] sm:$0xff]  ;;  %v20_v8 = vld [vmem:[%s176_s2] sm:$0xff]  ;;  %v23_v9 = vld [vmem:[%s176_s2 + $0x18] sm:$0xff] }
   0x4   :  { %72 = vmatpush.msra.mxu0 %v18_v1  ;;  %105 = vmatpush.msra.mxu1 %v18_v1  ;;  %v21_v10 = vld [vmem:[%s176_s2 + $0x8] sm:$0xff] }
   0x5   :  { %106 = vmatpush.msra.mxu2 %v18_v1  ;;  %107 = vmatpush.msra.mxu3 %v18_v1 }
   0x6   :  { %98 = vmatmul.msk.f32.vlgmr.msra.gmra.mxu0 %vm44_vm0, %v14_v3  ;;  %99 = vmatmul.msk.f32.vlgmr.msra.gmra.mxu1 %vm44_vm0, %v15_v4 }
   0x7   :  { %100 = vmatmul.msk.f32.vlgmr.msra.gmra.mxu2 %vm44_vm0, %v16_v5  ;;  %101 = vmatmul.msk.f32.vlgmr.msra.gmra.mxu3 %vm44_vm0, %v17_v6 }
   0x8   :  { %36 = vperm.xlu1 %110, %v22_v7   ;;  %26 = vperm.xlu0 %109, %v20_v8  }
  0x10   :  { %41 = vperm.xlu1 %110, %v23_v9   ;;  %31 = vperm.xlu0 %109, %v21_v10  }
  0x7a   :  { %v27_v11 = vpop.permute.xlu0 %26  ;;  %v37_v12 = vpop.permute.xlu1 %36 }
  0x82   :  { %v32_v13 = vpop.permute.xlu0 %31  ;;  %v42_v20 = vpop.permute.xlu1 %41 }
  0x83   :  { %v74_v14 = vpop.f32.mrf.mxu0  ;;  %v77_v15 = vpop.f32.mrf.mxu1 }
  0x84   :  { %v75_v16 = vadd.f32 %v74_v14, %v27_v11  ;;  %v78_v17 = vadd.f32 %v77_v15, %v32_v13 }
  0x86   :  { %v86_v18 = vmax.f32 %v75_v16, 0.0  ;;  %v87_v19 = vmax.f32 %v78_v17, 0.0 }
  0x88   :  { %90 = vst [vmem:[%s177_s3] sm:$0xff] %v86_v18 }
  0x89   :  { %91 = vst [vmem:[%s177_s3 + $0x8] sm:$0xff] %v87_v19 }
  0x8a   :  { %v80_v21 = vpop.f32.mrf.mxu2  ;;  %v83_v22 = vpop.f32.mrf.mxu3 }
  0x8b   :  { %v81_v23 = vadd.f32 %v80_v21, %v37_v12  ;;  %v84_v24 = vadd.f32 %v83_v22, %v42_v20 }
  0x8d   :  { %v88_v25 = vmax.f32 %v81_v23, 0.0  ;;  %v89_v26 = vmax.f32 %v84_v24, 0.0 }
  0x8f   :  { %92 = vst [vmem:[%s177_s3 + $0x10] sm:$0xff] %v88_v25 }
  0x90   :  { %93 = vst [vmem:[%s177_s3 + $0x18] sm:$0xff] %v89_v26 }

</bundles_post_ra>
